<compile_context>
chip_gen: v6e
topology: v6e:2x2x1
jax: 0.10.0
libtpu: 0.0.40
codegen_flags: <defaults>
</compile_context>

<pallas_src>
from functools import partial

import jax
import jax.numpy as jnp
from jax.experimental import pallas as pl
from jax.experimental.pallas import tpu as pltpu

N_HIDDEN = 20
N_GAUSSIANS = 5

_MAX_TILE_N = 32768          # largest lane tile (out tile ~2 MiB -> ~4-5 MiB VMEM w/ dbl buffering)
_MIN_TILE_FOR_SPLIT = 4096   # don't shrink tiles below this just to get a 2-step grid


def _round_up(a, b):
    return ((a + b - 1) // b) * b


def _tpu_supports_bf16_eup():
    """bf16 VPU/EUP exists on v6e/v7x, not on v5e and older."""
    try:
        d = jax.devices()[0]
        if d.platform != "tpu":
            return False
        kind = d.device_kind.lower()
        return ("v6" in kind) or ("v7" in kind) or ("tpu7" in kind)
    except Exception:  # pragma: no cover - defensive
        return False


def _mdn_kernel(x_ref, wh_ref, bh_ref, wheads_ref, bheads_ref, out_ref, *, g, use_bf16):
    x = x_ref[...]                                    # (1, TN)  batch on lanes, f32

    # First layer: fan_in == 1, so the "matmul" is a VPU broadcast multiply.
    #   z_pre = W_h * x + b_h : (H, 1)*(1, TN) + (H, 1) -> (H, TN)
    z_pre = wh_ref[...] * x + bh_ref[...]
    if use_bf16:
        # v6e/v7x: bf16 tanh runs ~2x on the EUP and feeds the MXU natively.
        z_h = jnp.tanh(z_pre.astype(jnp.bfloat16))    # (H, TN) bf16
        w_heads = wheads_ref[...].astype(jnp.bfloat16)
    else:
        # v5e: no bf16 VPU/EUP -- keep everything f32.
        z_h = jnp.tanh(z_pre)
        w_heads = wheads_ref[...]

    # Fused heads: one MXU matmul for pi/mu/sigma logits, f32 accumulation.
    #   (3G, H) @ (H, TN) + (3G, 1) -> (3G, TN)
    logits = jnp.dot(w_heads, z_h, preferred_element_type=jnp.float32) + bheads_ref[...]

    # Row-id masks over the full slab: rows [0:G)=pi, [G:2G)=mu, [2G:3G)=sigma.
    rows = jax.lax.broadcasted_iota(jnp.int32, logits.shape, 0)
    is_pi = rows < g
    is_sigma = rows >= 2 * g
    neg_inf = jnp.float32(-jnp.inf)

    # Numerically stable softmax over the pi rows only (masked max / sum).
    m = jnp.max(jnp.where(is_pi, logits, neg_inf), axis=0, keepdims=True)   # (1, TN)

    # One exp pass serves both heads: pi rows get exp(l - m), sigma rows get
    # exp(l), mu rows get exp(-inf) == 0 (their value is taken from logits).
    arg = jnp.where(is_pi, logits - m, jnp.where(is_sigma, logits, neg_inf))
    e = jnp.exp(arg)                                                         # (3G, TN)

    s = jnp.sum(jnp.where(is_pi, e, 0.0), axis=0, keepdims=True)             # (1, TN)
    inv_s = pl.reciprocal(s)   # exact: keeps log(pi) safe for a downstream NLL

    out_ref[...] = jnp.where(is_pi, e * inv_s, jnp.where(is_sigma, e, logits))


def _choose_tile_n(n):
    n128 = _round_up(max(n, 1), 128)
    if n128 > _MAX_TILE_N:
        return _MAX_TILE_N, n128
    if n128 >= 2 * _MIN_TILE_FOR_SPLIT:
        # Two (roughly even) grid steps so the single "parallel" axis keeps both
        # v7x TensorCores busy; each step is still >= _MIN_TILE_FOR_SPLIT lanes.
        return _round_up(pl.cdiv(n128, 2), 128), n128
    return n128, n128


def mdn_forward(x, params, transpose_outputs=True):
    """x: (N, 1) float32.

    transpose_outputs=True  -> (pi, mu, sigma), each (N, G)  (PyTorch semantics)
    transpose_outputs=False -> the raw lane-dense (3G, N) slab
                               (rows [0:G)=pi, [G:2G)=mu, [2G:3G)=sigma)
    """
    n = x.shape[0]
    h = params["w_h"].shape[0]
    g = params["w_heads"].shape[0] // 3

    tile_n, n128 = _choose_tile_n(n)
    n_pad = _round_up(n128, tile_n)
    grid = (n_pad // tile_n,)

    use_bf16 = _tpu_supports_bf16_eup()

    # Batch onto the lane axis, zero-padded to the tile boundary.
    x_t = jnp.zeros((1, n_pad), jnp.float32).at[0, :n].set(x[:, 0])

    out = pl.pallas_call(
        partial(_mdn_kernel, g=g, use_bf16=use_bf16),
        out_shape=jax.ShapeDtypeStruct((3 * g, n_pad), jnp.float32),
        grid=grid,
        in_specs=[
            pl.BlockSpec((1, tile_n), lambda i: (0, i)),      # x tile
            pl.BlockSpec((h, 1), lambda i: (0, 0)),           # w_h     (resident)
            pl.BlockSpec((h, 1), lambda i: (0, 0)),           # b_h     (resident)
            pl.BlockSpec((3 * g, h), lambda i: (0, 0)),       # w_heads (resident)
            pl.BlockSpec((3 * g, 1), lambda i: (0, 0)),       # b_heads (resident)
        ],
        out_specs=pl.BlockSpec((3 * g, tile_n), lambda i: (0, i)),
        compiler_params=pltpu.CompilerParams(
            dimension_semantics=("parallel",),
        ),
    )(x_t, params["w_h"], params["b_h"], params["w_heads"], params["b_heads"])

    if not transpose_outputs:
        return out[:, :n]

    # Single relayout pass: (3G, n) -> (3, G, n) -> (3, n, G); leading-dim
    # splits/slices are (near-)free, so the transpose touches the data once.
    out3 = jnp.transpose(out[:, :n].reshape(3, g, n), (0, 2, 1))
    return out3[0], out3[1], out3[2]


def init_params(key, n_hidden=N_HIDDEN, n_gaussians=N_GAUSSIANS):
    """Deterministic init mimicking nn.Linear (uniform +/- 1/sqrt(fan_in)).

    Lane-dense storage:
      w_h:     (H, 1)   (same as PyTorch Linear(1, H).weight)
      b_h:     (H, 1)
      w_heads: (3G, H)  = concat([w_pi, w_mu, w_sigma], axis=0)
      b_heads: (3G, 1)
    """
    keys = jax.random.split(key, 8)

    def lin(kw, kb, fan_in, fan_out):
        bound = 1.0 / jnp.sqrt(fan_in)
        w = jax.random.uniform(kw, (fan_out, fan_in), jnp.float32, -bound, bound)
        b = jax.random.uniform(kb, (fan_out, 1), jnp.float32, -bound, bound)
        return w, b

    w_h, b_h = lin(keys[0], keys[1], 1, n_hidden)
    w_pi, b_pi = lin(keys[2], keys[3], n_hidden, n_gaussians)
    w_mu, b_mu = lin(keys[4], keys[5], n_hidden, n_gaussians)
    w_sg, b_sg = lin(keys[6], keys[7], n_hidden, n_gaussians)

    return {
        "w_h": w_h, "b_h": b_h,
        "w_heads": jnp.concatenate([w_pi, w_mu, w_sg], axis=0),
        "b_heads": jnp.concatenate([b_pi, b_mu, b_sg], axis=0),
    }


def mdn_reference(x, p):
    g = p["w_heads"].shape[0] // 3
    z_h = jnp.tanh(x @ p["w_h"].T + p["b_h"][:, 0])
    logits = z_h @ p["w_heads"].T + p["b_heads"][:, 0]
    pi = jax.nn.softmax(logits[:, 0 * g:1 * g], axis=-1)
    mu = logits[:, 1 * g:2 * g]
    sigma = jnp.exp(logits[:, 2 * g:3 * g])
    return pi, mu, sigma


if __name__ == "__main__":
    key = jax.random.PRNGKey(0)
    k_x, k_p = jax.random.split(key)

    batch = 8
    x = jax.random.normal(k_x, (batch, 1), jnp.float32)
    params = init_params(k_p)

    fwd = jax.jit(mdn_forward)   # fuses pad + output transpose around the kernel
    pi, mu, sigma = fwd(x, params)
    jax.block_until_ready((pi, mu, sigma))

    # Sanity-check against pure-JAX f32 reference. Tolerances depend on whether
    # the generation-specific bf16 tanh/matmul path is active (v6e/v7x).
    pi_r, mu_r, sigma_r = mdn_reference(x, params)
    assert pi.shape == (batch, N_GAUSSIANS)
    assert mu.shape == (batch, N_GAUSSIANS)
    assert sigma.shape == (batch, N_GAUSSIANS)

    if _tpu_supports_bf16_eup():
        pi_atol, mu_atol, sg_atol, sg_rtol = 3e-2, 6e-2, 6e-2, 6e-2
    else:
        pi_atol, mu_atol, sg_atol, sg_rtol = 1e-5, 1e-5, 1e-5, 1e-5

    assert jnp.allclose(pi, pi_r, atol=pi_atol), "pi mismatch"
    assert jnp.allclose(mu, mu_r, atol=mu_atol), "mu mismatch"
    assert jnp.allclose(sigma, sigma_r, atol=sg_atol, rtol=sg_rtol), "sigma mismatch"

    print("KERNEL_OK")
</pallas_src>

<mosaic_0001>
module attributes {stable_mosaic.version = 11 : i64} {
  func.func @_mdn_kernel(%arg0: i32, %arg1: memref<1x128xf32, #tpu.memory_space<vmem>>, %arg2: memref<20x1xf32, #tpu.memory_space<vmem>>, %arg3: memref<20x1xf32, #tpu.memory_space<vmem>>, %arg4: memref<15x20xf32, #tpu.memory_space<vmem>>, %arg5: memref<15x1xf32, #tpu.memory_space<vmem>>, %arg6: memref<15x128xf32, #tpu.memory_space<vmem>>) attributes {dimension_semantics = [#tpu.dimension_semantics<parallel>], iteration_bounds = array<i64: 1>, scalar_prefetch = 0 : i64, scratch_operands = 0 : i64, tpu.core_type = #tpu.core_type<tc>, window_params = [{transform_indices = @transform_0, window_bounds = array<i64: 1, 128>}, {pipeline_mode = #tpu.pipeline_mode<synchronous>, transform_indices = @transform_1, window_bounds = array<i64: 20, 1>}, {pipeline_mode = #tpu.pipeline_mode<synchronous>, transform_indices = @transform_2, window_bounds = array<i64: 20, 1>}, {pipeline_mode = #tpu.pipeline_mode<synchronous>, transform_indices = @transform_3, window_bounds = array<i64: 15, 20>}, {pipeline_mode = #tpu.pipeline_mode<synchronous>, transform_indices = @transform_4, window_bounds = array<i64: 15, 1>}, {transform_indices = @transform_5, window_bounds = array<i64: 15, 128>}]} {
    %c0 = arith.constant 0 : index
    %c0_0 = arith.constant 0 : index
    %0 = vector.load %arg1[%c0, %c0_0] : memref<1x128xf32, #tpu.memory_space<vmem>>, vector<1x128xf32>
    %c0_1 = arith.constant 0 : index
    %c0_2 = arith.constant 0 : index
    %1 = vector.load %arg2[%c0_1, %c0_2] : memref<20x1xf32, #tpu.memory_space<vmem>>, vector<20x1xf32>
    %2 = vector.broadcast %1 : vector<20x1xf32> to vector<20x128xf32>
    %3 = vector.broadcast %0 : vector<1x128xf32> to vector<20x128xf32>
    %4 = arith.mulf %2, %3 : vector<20x128xf32>
    %c0_3 = arith.constant 0 : index
    %c0_4 = arith.constant 0 : index
    %5 = vector.load %arg3[%c0_3, %c0_4] : memref<20x1xf32, #tpu.memory_space<vmem>>, vector<20x1xf32>
    %6 = vector.broadcast %5 : vector<20x1xf32> to vector<20x128xf32>
    %7 = arith.addf %4, %6 : vector<20x128xf32>
    %8 = math.tanh %7 : vector<20x128xf32>
    %c0_5 = arith.constant 0 : index
    %c0_6 = arith.constant 0 : index
    %9 = vector.load %arg4[%c0_5, %c0_6] : memref<15x20xf32, #tpu.memory_space<vmem>>, vector<15x20xf32>
    %cst = arith.constant dense<0.000000e+00> : vector<15x128xf32>
    %10 = tpu.matmul %9, %8, %cst {dimension_numbers = #tpu.dot_dimension_numbers<[1], [0], [0], [1], [0, 0, 1, 1], [], []>} : vector<15x20xf32>, vector<20x128xf32>, vector<15x128xf32> -> vector<15x128xf32>
    %c0_7 = arith.constant 0 : index
    %c0_8 = arith.constant 0 : index
    %11 = vector.load %arg5[%c0_7, %c0_8] : memref<15x1xf32, #tpu.memory_space<vmem>>, vector<15x1xf32>
    %12 = vector.broadcast %11 : vector<15x1xf32> to vector<15x128xf32>
    %13 = arith.addf %10, %12 : vector<15x128xf32>
    %14 = tpu.iota {dimensions = array<i32: 0>} : vector<15x128xi32>
    %c5_i32 = arith.constant 5 : i32
    %15 = vector.broadcast %c5_i32 : i32 to vector<15x128xi32>
    %16 = arith.cmpi slt, %14, %15 : vector<15x128xi32>
    %c10_i32 = arith.constant 10 : i32
    %17 = vector.broadcast %c10_i32 : i32 to vector<15x128xi32>
    %18 = arith.cmpi sge, %14, %17 : vector<15x128xi32>
    %cst_9 = arith.constant 0xFF800000 : f32
    %19 = vector.broadcast %cst_9 : f32 to vector<15x128xf32>
    %20 = arith.select %16, %13, %19 : vector<15x128xi1>, vector<15x128xf32>
    %cst_10 = arith.constant dense<0xFF800000> : vector<128xf32>
    %21 = vector.multi_reduction <maximumf>, %20, %cst_10 [0] : vector<15x128xf32> to vector<128xf32>
    %22 = vector.shape_cast %21 : vector<128xf32> to vector<1x128xf32>
    %23 = vector.broadcast %22 : vector<1x128xf32> to vector<15x128xf32>
    %24 = arith.subf %13, %23 : vector<15x128xf32>
    %cst_11 = arith.constant 0xFF800000 : f32
    %25 = vector.broadcast %cst_11 : f32 to vector<15x128xf32>
    %26 = arith.select %18, %13, %25 : vector<15x128xi1>, vector<15x128xf32>
    %27 = arith.select %16, %24, %26 : vector<15x128xi1>, vector<15x128xf32>
    %28 = math.exp %27 : vector<15x128xf32>
    %cst_12 = arith.constant 0.000000e+00 : f32
    %29 = vector.broadcast %cst_12 : f32 to vector<15x128xf32>
    %30 = arith.select %16, %28, %29 : vector<15x128xi1>, vector<15x128xf32>
    %cst_13 = arith.constant dense<0.000000e+00> : vector<128xf32>
    %31 = vector.multi_reduction <add>, %30, %cst_13 [0] : vector<15x128xf32> to vector<128xf32>
    %32 = vector.shape_cast %31 : vector<128xf32> to vector<1x128xf32>
    %33 = tpu.reciprocal %32 : vector<1x128xf32> -> vector<1x128xf32>
    %34 = vector.broadcast %33 : vector<1x128xf32> to vector<15x128xf32>
    %35 = arith.mulf %28, %34 : vector<15x128xf32>
    %36 = arith.select %18, %28, %13 : vector<15x128xi1>, vector<15x128xf32>
    %37 = arith.select %16, %35, %36 : vector<15x128xi1>, vector<15x128xf32>
    %c0_14 = arith.constant 0 : index
    %c0_15 = arith.constant 0 : index
    %38 = vector.load %arg6[%c0_14, %c0_15] : memref<15x128xf32, #tpu.memory_space<vmem>>, vector<15x128xf32>
    tpu.vector_store %arg6[%c0_14, %c0_15], %37 {strides = array<i32>} : memref<15x128xf32, #tpu.memory_space<vmem>>, vector<15x128xf32>,
    return
  }
  func.func @transform_0(%arg0: i32) -> (i32, i32) {
    %c0_i32 = arith.constant 0 : i32
    %c0_i32_0 = arith.constant 0 : i32
    return %c0_i32, %arg0 : i32, i32
  }
  func.func @transform_1(%arg0: i32) -> (i32, i32) {
    %c0_i32 = arith.constant 0 : i32
    %c0_i32_0 = arith.constant 0 : i32
    %c0_i32_1 = arith.constant 0 : i32
    return %c0_i32, %c0_i32_0 : i32, i32
  }
  func.func @transform_2(%arg0: i32) -> (i32, i32) {
    %c0_i32 = arith.constant 0 : i32
    %c0_i32_0 = arith.constant 0 : i32
    %c0_i32_1 = arith.constant 0 : i32
    return %c0_i32, %c0_i32_0 : i32, i32
  }
  func.func @transform_3(%arg0: i32) -> (i32, i32) {
    %c0_i32 = arith.constant 0 : i32
    %c0_i32_0 = arith.constant 0 : i32
    %c0_i32_1 = arith.constant 0 : i32
    return %c0_i32, %c0_i32_0 : i32, i32
  }
  func.func @transform_4(%arg0: i32) -> (i32, i32) {
    %c0_i32 = arith.constant 0 : i32
    %c0_i32_0 = arith.constant 0 : i32
    %c0_i32_1 = arith.constant 0 : i32
    return %c0_i32, %c0_i32_0 : i32, i32
  }
  func.func @transform_5(%arg0: i32) -> (i32, i32) {
    %c0_i32 = arith.constant 0 : i32
    %c0_i32_0 = arith.constant 0 : i32
    return %c0_i32, %arg0 : i32, i32
  }
}

</mosaic_0001>

<bundles_post_ra>
// kernel: mdn_forward.1
= control target key start
LH: loop header
LB: loop body
LE: loop exit
PB: predicated region body
PF: predicated region fallthrough
CT: control target
= control target key end

     0   :  { %v256_v0 = vmov 0   ;;  %vm86_vm0 = vcmask 162816   ;;  %vm93_vm1 = vcmask 1043456   ;;  %v172_v27 = vlaneseq  ;;  %s334_s2 = inlined_call_operand.vmem [shape: f32[20,1], index: 2, kind: input, shape index: {}]   ;;  %s335_s1 = inlined_call_operand.vmem [shape: f32[20,1], index: 1, kind: input, shape index: {}]   ;;  %s336_s4 = inlined_call_operand.vmem [shape: f32[15,1], index: 4, kind: input, shape index: {}]   ;;  %s337_s3 = inlined_call_operand.vmem [shape: f32[15,20], index: 3, kind: input, shape index: {}]   ;;  %s338_s0 = inlined_call_operand.vmem [shape: f32[1,128], index: 0, kind: input, shape index: {}]   ;;  %s339_s5 = inlined_call_operand.vmem [shape: f32[15,128], index: 5, kind: output, shape index: {}]  }
   0x1   :  { %243 = vset.pattern.permute.xlu1 %v256_v0  ;;  %242 = vset.pattern.permute.xlu0 %v256_v0  ;;  %v50_v1 = vld [vmem:[%s334_s2 + $0x10] sm:$0xf]  ;;  %v22_v3 = vld [vmem:[%s335_s1 + $0x8] sm:$0xff]  ;;  %v21_v4 = vld [vmem:[%s335_s1] sm:$0xff] }
   0x2   :  { %v23_v2 = vld [vmem:[%s335_s1 + $0x10] sm:$0xf]  ;;  %63 = vperm.xlu1 %243, %v50_v1   ;;  %v49_v5 = vld [vmem:[%s334_s2 + $0x8] sm:$0xff]  ;;  %v48_v6 = vld [vmem:[%s334_s2] sm:$0xff]  ;;  %v173_v28 = vshrl.u32 %v172_v27, 7 }
   0x3   :  { %36 = vperm.xlu0 %242, %v23_v2   ;;  %v74_v7 = vld [vmem:[%s336_s4] sm:$0xff]  ;;  %v75_v8 = vld [vmem:[%s336_s4 + $0x8] sm:$0x7f] }
   0x4   :  { %v72_v9 = vld [vmem:[%s337_s3] sm:$0xff]  ;;  %v73_v26 = vld [vmem:[%s337_s3 + $0x8] sm:$0x7f]  ;;  %v174_v29 = vadd.s32 8, %v173_v28  ;;  %vm175_vm3 = vcmp.lt.s32.totalorder %v173_v28, 5 }
   0x5   :  { %238 = vmatprep.mubr.msk.f32.mxu0 %vm86_vm0, %v72_v9  ;;  %v223_v10 = vld [vmem:[%s338_s0] ss:$0 sm:$0xff] }
   0x6   :  { %26 = vperm.xlu1 %243, %v21_v4   ;;  %vm178_vm2 = vcmp.ge.s32.totalorder %v174_v29, 10 }
   0x7   :  { %31 = vperm.xlu0 %242, %v22_v3  }
   0xa   :  { %53 = vperm.xlu1 %243, %v48_v6  }
   0xb   :  { %58 = vperm.xlu0 %242, %v49_v5  }
   0xe   :  { %83 = vperm.xlu1 %243, %v75_v8  }
   0xf   :  { %78 = vperm.xlu0 %242, %v74_v7  }
  0x7d   :  { %v64_v11 = vpop.permute.xlu1 %63 }
  0x7e   :  { %v37_v12 = vpop.permute.xlu0 %36 }
  0x7f   :  { %v47_v13 = vmul.f32 %v223_v10, %v37_v12 }
  0x81   :  { %v68_v14 = vadd.f32 %v64_v11, %v47_v13  ;;  %v27_v16 = vpop.permute.xlu1 %26 }
  0x82   :  { %v32_v15 = vpop.permute.xlu0 %31  ;;  %v45_v18 = vmul.f32 %v223_v10, %v27_v16 }
  0x83   :  { %244 = vtanh.f32 %v68_v14  ;;  %v46_v17 = vmul.f32 %v223_v10, %v32_v15 }
  0x85   :  { %v54_v20 = vpop.permute.xlu1 %53 }
  0x86   :  { %v59_v19 = vpop.permute.xlu0 %58  ;;  %v66_v22 = vadd.f32 %v54_v20, %v45_v18 }
  0x87   :  { %v67_v21 = vadd.f32 %v59_v19, %v46_v17 }
  0x89   :  { %246 = vtanh.f32 %v67_v21  ;;  %v84_v30 = vpop.permute.xlu1 %83 }
  0x8a   :  { %248 = vtanh.f32 %v66_v22  ;;  %v79_v33 = vpop.permute.xlu0 %78 }
  0x90   :  { %v245_v23 = vpop.eup %244 }
  0x91   :  { %232 = vmatprep.subr.msk.mxu0 %vm93_vm1, %v245_v23 }
  0x92   :  { %233 = vmatpush3.msk.msra.mxu0 %vm93_vm1, %v245_v23 }
  0x96   :  { %v247_v24 = vpop.eup %246 }
  0x97   :  { %234 = vmatprep.subr.mxu0 %v247_v24  ;;  %v249_v25 = vpop.eup %248 }
  0x98   :  { %235 = vmatpush3.msra.mxu0 %v247_v24 }
  0x99   :  { %236 = vmatprep.subr.mxu0 %v249_v25 }
  0x9a   :  { %237 = vmatpush3.msra.mxu0 %v249_v25 }
  0x9b   :  { %239 = vmatmul.mubr.msk.f32.vlgmr.msra.gmra.mxu0 %vm86_vm0, %v73_v26 }
 0x15b   :  { %v240_v31 = vpop.f32.mrf.mxu0 }
 0x15c   :  { %v169_v32 = vadd.f32 %v240_v31, %v84_v30 }
 0x15d   :  { %v163_v34 = vpop.f32.mrf.mxu0 }
 0x15e   :  { %v193_v35 = vsel %vm178_vm2, %v169_v32, -inf  ;;  %v164_v36 = vadd.f32 %v163_v34, %v79_v33 }
 0x15f   :  { %v198_v37 = vmul.f32 1.442695, %v193_v35 }
 0x160   :  { %v179_v38 = vsel %vm175_vm3, %v164_v36, -inf }
 0x161   :  { %250 = vpow2.f32 %v198_v37  ;;  %v184_v39 = vrot.slane %v179_v38, 4 }
 0x163   :  { %v185_v40 = vmax.f32 %v179_v38, %v184_v39 }
 0x165   :  { %v186_v41 = vrot.slane %v185_v40, 2 }
 0x167   :  { %v187_v42 = vmax.f32 %v185_v40, %v186_v41 }
 0x169   :  { %v188_v43 = vrot.slane %v187_v42, 1 }
 0x16b   :  { %v189_v44 = vmax.f32 %v187_v42, %v188_v43 }
 0x16d   :  { %v190_v45 = vsub.f32 %v164_v36, %v189_v44 }
 0x16e   :  { %v251_v46 = vpop.eup %250 }
 0x16f   :  { %v214_v47 = vsel %vm178_vm2, %v251_v46, %v169_v32  ;;  %v194_v48 = vsel %vm175_vm3, %v190_v45, -inf }
 0x170   :  { %218 = vst [vmem:[%s339_s5 + $0x8] sm:$0x7f] %v214_v47  ;;  %v196_v49 = vmul.f32 1.442695, %v194_v48 }
 0x172   :  { %252 = vpow2.f32 %v196_v49 }
 0x17f   :  { %v253_v50 = vpop.eup %252 }
 0x180   :  { %v200_v51 = vsel %vm175_vm3, %v253_v50, 0.0 }
 0x181   :  { %v204_v52 = vrot.slane %v200_v51, 4 }
 0x183   :  { %v205_v53 = vadd.f32 %v204_v52, %v200_v51 }
 0x185   :  { %v206_v54 = vrot.slane %v205_v53, 2 }
 0x187   :  { %v207_v55 = vadd.f32 %v206_v54, %v205_v53 }
 0x189   :  { %v208_v56 = vrot.slane %v207_v55, 1 }
 0x18b   :  { %v209_v57 = vadd.f32 %v208_v56, %v207_v55 }
 0x18d   :  { %254 = vrcp.f32 %v209_v57 }
 0x19a   :  { %v255_v58 = vpop.eup %254 }
 0x19b   :  { %v211_v59 = vmul.f32 %v255_v58, %v253_v50 }
 0x19d   :  { %v215_v60 = vsel %vm175_vm3, %v211_v59, %v164_v36 }
 0x19e   :  { %217 = vst [vmem:[%s339_s5] sm:$0xff] %v215_v60 }

</bundles_post_ra>
